<compile_context>
chip_gen: v6e
topology: v6e:2x2x1
jax: 0.10.0
libtpu: 0.0.40
codegen_flags: <defaults>
</compile_context>

<pallas_src>
import functools

import jax
import jax.numpy as jnp
from jax import lax
from jax.experimental import pallas as pl
from jax.experimental.pallas import tpu as pltpu


_TILE_ELEMS_2D = 512 * 1024   # aligned path: ~2 MiB f32 per tile (x2 buffers)
_TILE_ELEMS_1D = 128 * 1024   # ragged rank-1 path: keep per-step unroll modest
# TODO(synk): on v7x raise the tile knobs to ~1<<20 elements; the 32 MiB VMEM
# limit below already leaves room for 2 x 4 MiB double-buffered tiles.
_VMEM_LIMIT_BYTES = 32 * 1024 * 1024


# ----------------------------------------------------------------------------
# Kernel
# ----------------------------------------------------------------------------
def _per_element_loss(x, mode, target_val):
    if mode == "lsgan":
        d = x - target_val
        return d * d
    if mode == "vanilla":
        # Numerically stable BCE-with-logits: max(x,0) - x*t + log1p(exp(-|x|)).
        return (jnp.maximum(x, 0.0) - x * target_val
                + jnp.log1p(jnp.exp(-jnp.abs(x))))
    # wgangp: +/- mean(x); the sign is folded into `scale`.
    return x


def _gan_loss_kernel(*refs, mode, target_val, compute_dtype, scale,
                     mask_kind, valid_count, block_stride, row_width,
                     include_ce, ce_batch, last_step):
    refs = list(refs)
    x_ref = refs.pop(0)
    idx_ref = refs.pop(0) if mask_kind == "elems_1d" else None
    logits_ref = refs.pop(0) if include_ce else None
    labels_ref = refs.pop(0) if include_ce else None
    o_ref = refs.pop(0)

    k = pl.program_id(0)

    # Element-wise loss in the compute dtype (bf16 for bf16 inputs on v6e/v7x,
    # f32 otherwise); accumulation always happens in f32.
    x = x_ref[...].astype(compute_dtype)
    per = _per_element_loss(x, mode, target_val).astype(jnp.float32)

    # Ragged-tail masking.  IMPORTANT: jnp.where is a SELECT, so NaN/Inf from
    # the undefined DMA overhang can never leak into the sum.
    if mask_kind == "rows":
        row = k * block_stride + lax.broadcasted_iota(jnp.int32, per.shape, 0)
        per = jnp.where(row < valid_count, per, 0.0)
    elif mask_kind == "elems_1d":
        pos = k * block_stride + idx_ref[...]
        per = jnp.where(pos < valid_count, per, 0.0)
    elif mask_kind == "elems_2d":
        row = k * block_stride + lax.broadcasted_iota(jnp.int32, per.shape, 0)
        col = lax.broadcasted_iota(jnp.int32, per.shape, 1)
        per = jnp.where(row * row_width + col < valid_count, per, 0.0)

    # Per-tile partial -> this tile's own (8,128) output block (no VMEM
    # accumulator, no read-modify-write; the grid axis stays parallel).
    partial = jnp.sum(per) * scale
    o_ref[...] = jnp.full((8, 128), partial, jnp.float32)

    if include_ce:
        # Fused cross-entropy over the small resident (B, C) logits block;
        # executed exactly once, on the last grid step only.
        @pl.when(k == last_step)
        def _():
            logits = logits_ref[...].astype(jnp.float32)
            m = jnp.max(logits, axis=-1, keepdims=True)
            lse = jnp.log(jnp.sum(jnp.exp(logits - m), axis=-1, keepdims=True)) + m
            cols = lax.broadcasted_iota(jnp.int32, logits.shape, 1)
            picked = jnp.sum(jnp.where(cols == labels_ref[...], logits, 0.0),
                             axis=-1, keepdims=True)
            ce = jnp.sum(lse - picked) * (1.0 / ce_batch)
            o_ref[...] = o_ref[...] + ce


# ----------------------------------------------------------------------------
# Launcher
# ----------------------------------------------------------------------------
def _run_kernel(x_arr, x_spec, *, mode, target_val, compute_dtype, scale,
                mask_kind, valid_count, block_stride, row_width, num_blocks,
                idx_arr=None, cond_logits=None, labels=None,
                flops=0, transcendentals=0, bytes_accessed=0):
    include_ce = cond_logits is not None

    inputs = [x_arr]
    in_specs = [x_spec]
    if idx_arr is not None:
        inputs.append(idx_arr)
        in_specs.append(pl.BlockSpec(idx_arr.shape, lambda k: (0,)))  # resident
    if include_ce:
        b, c = int(cond_logits.shape[0]), int(cond_logits.shape[1])
        inputs.append(cond_logits)
        in_specs.append(pl.BlockSpec((b, c), lambda k: (0, 0)))       # resident
        inputs.append(labels.reshape(b, 1).astype(jnp.int32))
        in_specs.append(pl.BlockSpec((b, 1), lambda k: (0, 0)))       # resident

    kernel = functools.partial(
        _gan_loss_kernel, mode=mode, target_val=target_val,
        compute_dtype=compute_dtype, scale=scale, mask_kind=mask_kind,
        valid_count=valid_count, block_stride=block_stride, row_width=row_width,
        include_ce=include_ce,
        ce_batch=(int(cond_logits.shape[0]) if include_ce else 1),
        last_step=num_blocks - 1)

    out = pl.pallas_call(
        kernel,
        out_shape=jax.ShapeDtypeStruct((num_blocks * 8, 128), jnp.float32),
        grid=(num_blocks,),
        in_specs=in_specs,
        out_specs=pl.BlockSpec((8, 128), lambda k: (k, 0)),
        compiler_params=pltpu.CompilerParams(
            dimension_semantics=("parallel",),
            vmem_limit_bytes=_VMEM_LIMIT_BYTES),
        cost_estimate=pl.CostEstimate(
            flops=int(flops), transcendentals=int(transcendentals),
            bytes_accessed=int(bytes_accessed)),
    )(*inputs)

    partials = out.reshape(num_blocks, 8, 128)[:, 0, 0]
    return jnp.sum(partials)


def gan_loss_pallas(predictions, gan_mode, target_is_real,
                    cond_logits=None, labels=None,
                    tile_elems_2d=_TILE_ELEMS_2D, tile_elems_1d=_TILE_ELEMS_1D):
    """GAN loss (+ optional fused cross-entropy) in a single pallas_call."""
    if gan_mode not in ("lsgan", "vanilla", "wgangp"):
        raise NotImplementedError(f"gan mode {gan_mode} not implemented")
    n = int(predictions.size)
    assert n > 0, "empty predictions"

    sign = -1.0 if (gan_mode == "wgangp" and target_is_real) else 1.0
    scale = sign / float(n)
    target_val = 1.0 if target_is_real else 0.0
    compute_dtype = (jnp.bfloat16 if predictions.dtype == jnp.bfloat16
                     else jnp.float32)

    flops = 6 * n
    trans = 2 * n if gan_mode == "vanilla" else 0
    bytes_accessed = n * predictions.dtype.itemsize
    if cond_logits is not None:
        bytes_accessed += cond_logits.size * cond_logits.dtype.itemsize + labels.size * 4

    common = dict(mode=gan_mode, target_val=target_val,
                  compute_dtype=compute_dtype, scale=scale,
                  cond_logits=cond_logits, labels=labels,
                  flops=flops, transcendentals=trans,
                  bytes_accessed=bytes_accessed)

    flat = predictions.reshape(-1)   # native dtype; no f32 cast, no pad

    if n % 128 == 0:
        # ---- aligned fast path: lane-dense (rows, tn) 2-D tiles, no padding ----
        tn = 128
        for cand in (512, 256):
            if n % cand == 0:
                tn = cand
                break
        rows = n // tn
        max_tm = max(8, tile_elems_2d // tn)        # multiple of 8 for tn>=128
        if rows <= max_tm:
            tm, num_blocks, mask_kind = rows, 1, "none"
        else:
            tm = max_tm
            num_blocks = -(-rows // tm)
            mask_kind = "none" if rows % tm == 0 else "rows"
        x2d = flat.reshape(rows, tn)
        return _run_kernel(
            x2d, pl.BlockSpec((tm, tn), lambda k: (k, 0)),
            mask_kind=mask_kind, valid_count=rows, block_stride=tm,
            row_width=tn, num_blocks=num_blocks, **common)

    # ---- ragged path: rank-1 blocks straight off the flat array (no jnp.pad) ----
    try:
        if n <= tile_elems_1d:
            be, num_blocks, mask_kind, idx = n, 1, "none", None
        else:
            be = tile_elems_1d                       # multiple of 1024
            num_blocks = -(-n // be)
            mask_kind = "elems_1d"
            idx = jnp.arange(be, dtype=jnp.int32)    # resident index vector
        return _run_kernel(
            flat, pl.BlockSpec((be,), lambda k: (k,)),
            mask_kind=mask_kind, valid_count=n, block_stride=be,
            row_width=1, num_blocks=num_blocks, idx_arr=idx, **common)
    except Exception:
        # Safety net only: fall back to the previously validated padded 2-D
        # path (element-granular masking) if the rank-1 path fails to lower.
        tn = 128
        pad = (-n) % tn
        x2d = jnp.pad(flat, (0, pad)).reshape(-1, tn)
        rows = x2d.shape[0]
        max_tm = max(8, tile_elems_2d // tn)
        if rows <= max_tm:
            tm, num_blocks = rows, 1
        else:
            tm = max_tm
            num_blocks = -(-rows // tm)
        return _run_kernel(
            x2d, pl.BlockSpec((tm, tn), lambda k: (k, 0)),
            mask_kind="elems_2d", valid_count=n, block_stride=tm,
            row_width=tn, num_blocks=num_blocks, **common)


# ----------------------------------------------------------------------------
# GANLoss wrapper (mirrors the PyTorch module forward)
# ----------------------------------------------------------------------------
class GANLoss:
    def __init__(self, gan_mode: str):
        if gan_mode not in ("lsgan", "vanilla", "wgangp"):
            raise NotImplementedError(f"gan mode {gan_mode} not implemented")
        self.gan_mode = gan_mode
        self.real_label = jnp.float32(1.0)
        self.fake_label = jnp.float32(0.0)
        # TODO(synk): 'wgangp' registers GradientNormLoss(k=1.0) as self.loss in
        # __init__, but forward() never calls it (it uses +/- mean directly); the
        # gradient-penalty path (autograd.grad through the discriminator) has no
        # standalone Pallas forward equivalent here.

    def __call__(self, output, target):
        predictions = output["output"]
        cond_logits = output.get("cond_logits", None)
        # NOTE: target_is_real must be a static Python bool (not a traced array).
        target_is_real = bool(target["target_is_real"])
        labels = target.get("labels", None)

        include_ce = (cond_logits is not None) and target_is_real
        if include_ce:
            assert labels is not None, "labels required when cond_logits is given"

        return gan_loss_pallas(
            predictions, self.gan_mode, target_is_real,
            cond_logits if include_ce else None,
            labels if include_ce else None)


# ----------------------------------------------------------------------------
# Demo / smoke test
# ----------------------------------------------------------------------------
if __name__ == "__main__":
    key = jax.random.PRNGKey(0)
    k1, k2, k3, k4, k5, k6, k7 = jax.random.split(key, 7)

    # Discriminator patch output (NCHW), B=2, C=1, H=W=16
    predictions = jax.random.normal(k1, (2, 1, 16, 16), dtype=jnp.float32)
    num_classes = 8
    cond_logits = jax.random.normal(k2, (2, num_classes), dtype=jnp.float32)
    labels = jax.random.randint(k3, (2,), 0, num_classes, dtype=jnp.int32)

    def ref_gan(preds, mode, is_real):
        x = preds.reshape(-1).astype(jnp.float32)
        if mode == "lsgan":
            t = 1.0 if is_real else 0.0
            return jnp.mean((x - t) ** 2)
        if mode == "vanilla":
            t = 1.0 if is_real else 0.0
            return jnp.mean(jnp.maximum(x, 0.0) - x * t + jnp.log1p(jnp.exp(-jnp.abs(x))))
        return -jnp.mean(x) if is_real else jnp.mean(x)

    lm = cond_logits - jax.scipy.special.logsumexp(cond_logits, axis=1, keepdims=True)
    ref_ce = -jnp.mean(lm[jnp.arange(2), labels])

    for mode in ("lsgan", "vanilla", "wgangp"):
        crit = GANLoss(mode)
        for is_real in (True, False):
            out = {"output": predictions, "cond_logits": cond_logits}
            tgt = {"target_is_real": is_real, "labels": labels}
            loss = jax.block_until_ready(crit(out, tgt))
            ref = ref_gan(predictions, mode, is_real)
            if is_real:
                ref = ref + ref_ce
            assert jnp.allclose(loss, ref, atol=1e-5, rtol=1e-5), (mode, is_real, loss, ref)

    # No-cond-logits path.
    crit = GANLoss("lsgan")
    loss = jax.block_until_ready(crit({"output": predictions}, {"target_is_real": True}))
    assert jnp.allclose(loss, ref_gan(predictions, "lsgan", True), atol=1e-5)

    # Small ragged case (element count not a multiple of 128): pad-free 1-D path.
    preds_ragged = jax.random.normal(k4, (2, 3, 17, 23), dtype=jnp.float32)
    crit = GANLoss("vanilla")
    loss = jax.block_until_ready(crit({"output": preds_ragged}, {"target_is_real": False}))
    assert jnp.allclose(loss, ref_gan(preds_ragged, "vanilla", False), atol=1e-4, rtol=1e-5)

    # bf16 predictions: native-dtype streaming, bf16 element math, f32 accumulation.
    preds_bf16 = predictions.astype(jnp.bfloat16)
    crit = GANLoss("lsgan")
    loss = jax.block_until_ready(crit({"output": preds_bf16}, {"target_is_real": False}))
    ref = ref_gan(preds_bf16.astype(jnp.float32), "lsgan", False)
    assert jnp.allclose(loss, ref, atol=1e-2, rtol=1e-2)

    # Moderately large aligned case (single 2-D block).
    preds_big = jax.random.normal(k5, (4, 4, 128, 160), dtype=jnp.float32)
    crit = GANLoss("wgangp")
    loss = jax.block_until_ready(crit({"output": preds_big}, {"target_is_real": True}))
    assert jnp.allclose(loss, ref_gan(preds_big, "wgangp", True), atol=1e-4, rtol=1e-4)

    # Aligned multi-block case with a partial last row-block (2-D row masking).
    preds_tiled = jax.random.normal(k6, (6, 1, 512, 256), dtype=jnp.float32)
    crit = GANLoss("lsgan")
    loss = jax.block_until_ready(crit({"output": preds_tiled}, {"target_is_real": True}))
    assert jnp.allclose(loss, ref_gan(preds_tiled, "lsgan", True), atol=1e-4, rtol=1e-4)

    # Large ragged case: multi-block pad-free 1-D path with the resident index mask.
    preds_big_ragged = jax.random.normal(k7, (3, 7, 241, 593), dtype=jnp.float32)
    crit = GANLoss("vanilla")
    loss = jax.block_until_ready(crit({"output": preds_big_ragged}, {"target_is_real": False}))
    assert jnp.allclose(loss, ref_gan(preds_big_ragged, "vanilla", False), atol=1e-4, rtol=1e-4)

    print("KERNEL_OK")
</pallas_src>

<mosaic_0001>
module attributes {stable_mosaic.version = 11 : i64} {
  func.func @_gan_loss_kernel(%arg0: i32, %arg1: memref<1x512xf32, #tpu.memory_space<vmem>>, %arg2: memref<2x8xf32, #tpu.memory_space<vmem>>, %arg3: memref<2x1xi32, #tpu.memory_space<vmem>>, %arg4: memref<8x128xf32, #tpu.memory_space<vmem>>) attributes {dimension_semantics = [#tpu.dimension_semantics<parallel>], iteration_bounds = array<i64: 1>, scalar_prefetch = 0 : i64, scratch_operands = 0 : i64, tpu.core_type = #tpu.core_type<tc>, window_params = [{transform_indices = @transform_0, window_bounds = array<i64: 1, 512>}, {pipeline_mode = #tpu.pipeline_mode<synchronous>, transform_indices = @transform_1, window_bounds = array<i64: 2, 8>}, {pipeline_mode = #tpu.pipeline_mode<synchronous>, transform_indices = @transform_2, window_bounds = array<i64: 2, 1>}, {transform_indices = @transform_3, window_bounds = array<i64: 8, 128>}]} {
    %c0 = arith.constant 0 : index
    %c0_0 = arith.constant 0 : index
    %0 = vector.load %arg1[%c0, %c0_0] : memref<1x512xf32, #tpu.memory_space<vmem>>, vector<1x512xf32>
    %cst = arith.constant 1.000000e+00 : f32
    %1 = vector.broadcast %cst : f32 to vector<1x512xf32>
    %2 = arith.subf %0, %1 : vector<1x512xf32>
    %3 = arith.mulf %2, %2 : vector<1x512xf32>
    %4 = vector.shape_cast %3 : vector<1x512xf32> to vector<1x1x512xf32>
    %cst_1 = arith.constant dense<0.000000e+00> : vector<1xf32>
    %5 = vector.multi_reduction <add>, %4, %cst_1 [1, 2] : vector<1x1x512xf32> to vector<1xf32>
    %6 = vector.shape_cast %5 : vector<1xf32> to vector<1x1x1xf32>
    %7 = vector.extract %6[0, 0, 0] : f32 from vector<1x1x1xf32>
    %cst_2 = arith.constant 0.001953125 : f32
    %8 = arith.mulf %7, %cst_2 : f32
    %9 = vector.broadcast %8 : f32 to vector<8x128xf32>
    %c0_3 = arith.constant 0 : index
    %c0_4 = arith.constant 0 : index
    %10 = vector.load %arg4[%c0_3, %c0_4] : memref<8x128xf32, #tpu.memory_space<vmem>>, vector<8x128xf32>
    tpu.vector_store %arg4[%c0_3, %c0_4], %9 {strides = array<i32>} : memref<8x128xf32, #tpu.memory_space<vmem>>, vector<8x128xf32>,
    %c0_i32 = arith.constant 0 : i32
    %11 = arith.cmpi eq, %arg0, %c0_i32 : i32
    %12 = arith.extui %11 : i1 to i32
    %c0_i32_5 = arith.constant 0 : i32
    %13 = arith.cmpi ne, %12, %c0_i32_5 : i32
    scf.if %13 {
      %c0_6 = arith.constant 0 : index
      %c0_7 = arith.constant 0 : index
      %14 = vector.load %arg2[%c0_6, %c0_7] : memref<2x8xf32, #tpu.memory_space<vmem>>, vector<2x8xf32>
      %cst_8 = arith.constant dense<0xFF800000> : vector<2xf32>
      %15 = vector.multi_reduction <maximumf>, %14, %cst_8 [1] : vector<2x8xf32> to vector<2xf32>
      %16 = vector.shape_cast %15 : vector<2xf32> to vector<2x1xf32>
      %17 = vector.broadcast %16 : vector<2x1xf32> to vector<2x8xf32>
      %18 = arith.subf %14, %17 : vector<2x8xf32>
      %19 = math.exp %18 : vector<2x8xf32>
      %cst_9 = arith.constant dense<0.000000e+00> : vector<2xf32>
      %20 = vector.multi_reduction <add>, %19, %cst_9 [1] : vector<2x8xf32> to vector<2xf32>
      %21 = vector.shape_cast %20 : vector<2xf32> to vector<2x1xf32>
      %22 = math.log %21 : vector<2x1xf32>
      %23 = arith.addf %22, %16 : vector<2x1xf32>
      %24 = tpu.iota {dimensions = array<i32: 1>} : vector<2x8xi32>
      %c0_10 = arith.constant 0 : index
      %c0_11 = arith.constant 0 : index
      %25 = vector.load %arg3[%c0_10, %c0_11] : memref<2x1xi32, #tpu.memory_space<vmem>>, vector<2x1xi32>
      %26 = vector.broadcast %25 : vector<2x1xi32> to vector<2x8xi32>
      %27 = arith.cmpi eq, %24, %26 : vector<2x8xi32>
      %cst_12 = arith.constant 0.000000e+00 : f32
      %28 = vector.broadcast %cst_12 : f32 to vector<2x8xf32>
      %29 = arith.select %27, %14, %28 : vector<2x8xi1>, vector<2x8xf32>
      %cst_13 = arith.constant dense<0.000000e+00> : vector<2xf32>
      %30 = vector.multi_reduction <add>, %29, %cst_13 [1] : vector<2x8xf32> to vector<2xf32>
      %31 = vector.shape_cast %30 : vector<2xf32> to vector<2x1xf32>
      %32 = arith.subf %23, %31 : vector<2x1xf32>
      %33 = vector.shape_cast %32 : vector<2x1xf32> to vector<1x2x1xf32>
      %cst_14 = arith.constant dense<0.000000e+00> : vector<1xf32>
      %34 = vector.multi_reduction <add>, %33, %cst_14 [1, 2] : vector<1x2x1xf32> to vector<1xf32>
      %35 = vector.shape_cast %34 : vector<1xf32> to vector<1x1x1xf32>
      %36 = vector.extract %35[0, 0, 0] : f32 from vector<1x1x1xf32>
      %cst_15 = arith.constant 5.000000e-01 : f32
      %37 = arith.mulf %36, %cst_15 : f32
      %c0_16 = arith.constant 0 : index
      %c0_17 = arith.constant 0 : index
      %38 = vector.load %arg4[%c0_16, %c0_17] : memref<8x128xf32, #tpu.memory_space<vmem>>, vector<8x128xf32>
      %39 = vector.broadcast %37 : f32 to vector<8x128xf32>
      %40 = arith.addf %38, %39 : vector<8x128xf32>
      %c0_18 = arith.constant 0 : index
      %c0_19 = arith.constant 0 : index
      %41 = vector.load %arg4[%c0_18, %c0_19] : memref<8x128xf32, #tpu.memory_space<vmem>>, vector<8x128xf32>
      tpu.vector_store %arg4[%c0_18, %c0_19], %40 {strides = array<i32>} : memref<8x128xf32, #tpu.memory_space<vmem>>, vector<8x128xf32>,
    } else {
    }
    return
  }
  func.func @transform_0(%arg0: i32) -> (i32, i32) {
    %c0_i32 = arith.constant 0 : i32
    %c0_i32_0 = arith.constant 0 : i32
    return %arg0, %c0_i32 : i32, i32
  }
  func.func @transform_1(%arg0: i32) -> (i32, i32) {
    %c0_i32 = arith.constant 0 : i32
    %c0_i32_0 = arith.constant 0 : i32
    %c0_i32_1 = arith.constant 0 : i32
    return %c0_i32, %c0_i32_0 : i32, i32
  }
  func.func @transform_2(%arg0: i32) -> (i32, i32) {
    %c0_i32 = arith.constant 0 : i32
    %c0_i32_0 = arith.constant 0 : i32
    %c0_i32_1 = arith.constant 0 : i32
    return %c0_i32, %c0_i32_0 : i32, i32
  }
  func.func @transform_3(%arg0: i32) -> (i32, i32) {
    %c0_i32 = arith.constant 0 : i32
    %c0_i32_0 = arith.constant 0 : i32
    return %arg0, %c0_i32 : i32, i32
  }
}

</mosaic_0001>

<bundles_post_ra>
// kernel: tpu_custom_call.1
= control target key start
LH: loop header
LB: loop body
LE: loop exit
PB: predicated region body
PF: predicated region fallthrough
CT: control target
= control target key end

     0   :  { %8 = vsyncpa [#allocation3], 0  ;;  %s227_s0 = inlined_call_operand.hbm [shape: f32[1,512], index: 0, kind: input, shape index: {}]   ;;  %s228_s1 = inlined_call_operand.vmem [shape: f32[2,8], index: 1, kind: input, shape index: {}]   ;;  %s229_s2 = inlined_call_operand.vmem [shape: s32[2,1], index: 2, kind: input, shape index: {}]   ;;  %s230_s3 = inlined_call_operand.hbm [shape: f32[8,128], index: 3, kind: output, shape index: {}]  }
   0x1   :  { %9 = vsyncpa [#allocation4], 0  ;;  %s189_s12 = smov [#allocation2]  }
   0x2   :  { %s16_s13 = sshll.u32 %s189_s12, 4  ;;  %s17_s13 = int_to_ptr.vmem [resolvable:$true] %s16_s13 }
   0x3   :  { %s153_s14 = scalar_lea.vmem %s17_s13, 64  ;;  %p158_p1 = scmp.lt.s32.totalorder %s17_s13, %s17_s13 }
   0x4   :  { %p154_p0 = scmp.ne.s32.totalorder %s17_s13, %s153_s14  ;;  %p159_p2 = scmp.lt.s32.totalorder %s153_s14, %s153_s14 }
   0x6   :  { %p160_p3 = por %p159_p2, %p158_p1 }
   0x8   :  { %p161_p4 = pnand %p160_p3, %p154_p0 }
   0xa   :  { %164 = shalt.err (!%p161_p4)
}
   0xb   :  { %19 = dma.hbm_to_vmem [thread:$0]  %s227_s0, 64, %s17_s13, [#allocation3]  }
   0xc   :  { %185 = dma.done.wait [#allocation3], 64  }
   0xd   :  { %186 = vsyncadd [#allocation3], 4294967232  ;;  %v190_v0 = vmov 0   ;;  %vm76_vm0 = vcmask 58368   ;;  %v75_v1 = vld [vmem:[%s228_s1] sm:$0x3]  ;;  %v31_v7 = vlaneseq }
   0xe   :  { %140 = vset.pattern.permute.xlu0 %v190_v0  ;;  %v77_v2 = vsel %vm76_vm0, %v75_v1, -inf  ;;  %v91_v3 = vld [vmem:[%s229_s2] sm:$0x3]  ;;  %vm51_vm2 = vcmask 1040384   ;;  %vm101_vm3 = vcmask 1024   ;;  %s191_s22 = smov [#allocation5]  }
   0xf   :  { %78 = vmax.xlane.f32.xlu0 %v77_v2  ;;  %v90_v8 = vand.u32 127, %v31_v7  ;;  %v32_v14 = vshrl.u32 %v31_v7, 7  ;;  %v27_v15 = vld [vmem:[#allocation2] sm:$0xf]  ;;  %s123_s23 = sshll.u32 %s191_s22, 4  ;;  %s124_s23 = int_to_ptr.vmem [resolvable:$true] %s123_s23 }
  0x10   :  { %v132_v16 = vadd.f32 -1.0, %v27_v15  ;;  %s165_s24 = scalar_lea.vmem %s124_s23, 128  ;;  %p170_p6 = scmp.lt.s32.totalorder %s124_s23, %s124_s23 }
  0x11   :  { %v33_v18 = vsub.s32 0, %v32_v14  ;;  %v37_v19 = vsub.s32 1, %v32_v14  ;;  %v41_v22 = vsub.s32 2, %v32_v14  ;;  %v45_v24 = vsub.s32 3, %v32_v14  ;;  %p166_p5 = scmp.ne.s32.totalorder %s124_s23, %s165_s24  ;;  %p171_p7 = scmp.lt.s32.totalorder %s165_s24, %s165_s24 }
  0x12   :  { %v29_v17 = vmul.f32 %v132_v16, %v132_v16 }
  0x13   :  { %p172_p8 = por %p171_p7, %p170_p6 }
  0x14   :  { %v34_v20 = vrot.slane %v29_v17, %v33_v18  ;;  %v38_v21 = vrot.slane %v29_v17, %v37_v19  ;;  %v42_v23 = vrot.slane %v29_v17, %v41_v22  ;;  %v46_v28 = vrot.slane %v29_v17, %v45_v24 }
  0x15   :  { %p173_p9 = pnand %p172_p8, %p166_p5 }
  0x16   :  { %v52_v25 = vsel %vm51_vm2, %v34_v20, 0.0  ;;  %v53_v26 = vsel %vm51_vm2, %v38_v21, 0.0  ;;  %v55_v29 = vsel %vm51_vm2, %v42_v23, 0.0  ;;  %v57_v31 = vsel %vm51_vm2, %v46_v28, 0.0 }
  0x17   :  { %v54_v27 = vadd.f32 %v53_v26, %v52_v25 }
  0x19   :  { %v56_v30 = vadd.f32 %v55_v29, %v54_v27 }
  0x1b   :  { %v58_v32 = vadd.f32 %v57_v31, %v56_v30 }
  0x25   :  { %93 = vperm.xlu0 %140, %v91_v3  }
  0x98   :  { %v79_v4 = vpop.xlane.xlu0 %78 }
  0x99   :  { %v80_v5 = vsub.f32 %v75_v1, %v79_v4 }
  0x9b   :  { %v81_v6 = vmul.f32 1.442695, %v80_v5 }
  0x9d   :  { %141 = vpow2.f32 %v81_v6 }
  0xa0   :  { %v94_v9 = vpop.permute.xlu0 %93 }
  0xa1   :  { %vm95_vm1 = vcmp.eq.s32.totalorder %v90_v8, %v94_v9 }
  0xa2   :  { %v96_v11 = vsel %vm95_vm1, %v75_v1, 0.0 }
  0xa3   :  { %v97_v13 = vsel %vm76_vm0, %v96_v11, 0.0 }
  0xaa   :  { %v142_v10 = vpop.eup %141 }
  0xab   :  { %v83_v12 = vsel %vm76_vm0, %v142_v10, 0.0 }
  0xac   :  { %84 = vadd.xlane.f32.xlu1 %v83_v12 }
  0xb0   :  { %98 = vadd.xlane.f32.xlu1 %v97_v13 }
  0xb4   :  { %59 = vadd.xlane.f32.xlu1 %v58_v32 }
 0x135   :  { %v85_v33 = vpop.xlane.xlu1 %84 }
 0x136   :  { %143 = vlog2.f32 %v85_v33 }
 0x139   :  { %v99_v36 = vpop.xlane.xlu1 %98 }
 0x13d   :  { %v60_v40 = vpop.xlane.xlu1 %59 }
 0x13e   :  { %v61_v41 = vrot.slane %v60_v40, 4 }
 0x140   :  { %v62_v42 = vadd.f32 %v61_v41, %v60_v40 }
 0x142   :  { %v63_v43 = vrot.slane %v62_v42, 2 }
 0x143   :  { %v144_v34 = vpop.eup %143 }
 0x144   :  { %v87_v35 = vmul.f32 0.6931472, %v144_v34  ;;  %v64_v44 = vadd.f32 %v63_v43, %v62_v42 }
 0x146   :  { %v88_v37 = vadd.f32 %v87_v35, %v79_v4  ;;  %v65_v45 = vrot.slane %v64_v44, 1 }
 0x148   :  { %v100_v38 = vsub.f32 %v88_v37, %v99_v36  ;;  %v66_v46 = vadd.f32 %v65_v45, %v64_v44 }
 0x14a   :  { %v102_v39 = vsel %vm101_vm3, %v100_v38, 0.0  ;;  %133 = vpush %v66_v46 }
 0x14b   :  { %103 = vadd.xlane.f32.xlu1 %v102_v39 }
 0x17b   :  { %s134_s0 = spop %133 }
 0x17c   :  { %s68_s1 = smul.f32 0.001953125, %s134_s0 }
 0x17e   :  { %v69_v54 = vstv %s68_s1 }
 0x1d4   :  { %v104_v47 = vpop.xlane.xlu1 %103 }
 0x1d5   :  { %v105_v48 = vrot.slane %v104_v47, 4 }
 0x1d7   :  { %v106_v49 = vadd.f32 %v105_v48, %v104_v47 }
 0x1d9   :  { %v107_v50 = vrot.slane %v106_v49, 2 }
 0x1db   :  { %v108_v51 = vadd.f32 %v107_v50, %v106_v49 }
 0x1dd   :  { %v109_v52 = vrot.slane %v108_v51, 1 }
 0x1df   :  { %v110_v53 = vadd.f32 %v109_v52, %v108_v51 }
 0x1e1   :  { %135 = vpush %v110_v53 }
 0x212   :  { %s136_s2 = spop %135 }
 0x213   :  { %s112_s21 = smul.f32 0.5, %s136_s2 }
 0x215   :  { %v114_v55 = vstv %s112_s21 }
 0x216   :  { %v115_v56 = vadd.f32 %v114_v55, %v69_v54 }
 0x218   :  { %116 = vst [vmem:[#allocation5] sm:$0xff] %v115_v56 }
 0x219   :  { %176 = shalt.err (!%p173_p9)
}
 0x21a   :  { %126 = dma.vmem_to_hbm [thread:$0]  %s124_s23, 128, %s230_s3, [#allocation4]  }
 0x21b   :  { %187 = dma.done.wait [#allocation4], 128  }
 0x21c   :  { %188 = vsyncadd [#allocation4], 4294967168 }
 0x21d   :  { %130 = vsyncpa [#allocation3], 1 }
 0x21e   :  { %131 = vsyncpa [#allocation4], 1 }

</bundles_post_ra>
